<compile_context>
chip_gen: v5e
topology: v5e:2x2
jax: 0.10.0
libtpu: 0.0.40
codegen_flags: <defaults>
</compile_context>

<pallas_src>
import jax
import jax.numpy as jnp
from jax.experimental import pallas as pl
from jax.experimental.pallas import tpu as pltpu


def _round_up(a, b):
    return (a + b - 1) // b * b


def _largest_divisor_tile(n, align, max_tile):
    """Largest t with t % align == 0, t <= max_tile and n % t == 0 (or None)."""
    best = None
    t = align
    limit = min(n, max_tile)
    while t <= limit:
        if n % t == 0:
            best = t
        t += align
    return best


def cca_scale_relu_kernel(scale_ref, x_ref, o_ref):
    # scale_ref: (R, 1) f32   x_ref / o_ref: (R, T)
    # One VPU pass: per-row broadcast multiply + ReLU.
    s = x_ref[...].astype(jnp.float32) * scale_ref[...]
    o_ref[...] = jnp.maximum(s, 0.0).astype(o_ref.dtype)


def cca_forward(g, x, wx, bx, wg, bg, *, block_bytes=4 * 1024 * 1024):
    """CCA forward. g: (B, F_g, Hg, Wg), x: (B, F_x, H, W) -> (B, F_x, H, W)."""
    B, F_x, H, W = x.shape
    L = H * W
    rows = B * F_x
    out_dtype = x.dtype
    itemsize = jnp.dtype(out_dtype).itemsize
    sublane = {4: 8, 2: 16, 1: 32}.get(itemsize, 8)

    # ---- channel attention: tiny, stays in plain JAX / XLA -----------------
    avg_x = jnp.mean(x.astype(jnp.float32), axis=(2, 3))            # (B, F_x)
    avg_g = jnp.mean(g.astype(jnp.float32), axis=(2, 3))            # (B, F_g)
    att = (avg_x @ wx.astype(jnp.float32).T + bx.astype(jnp.float32)
           + avg_g @ wg.astype(jnp.float32).T + bg.astype(jnp.float32)) * 0.5
    scale = jax.nn.sigmoid(att)                                     # (B, F_x) f32

    # ---- fold (B, C) into one row axis: x is a (rows, L) stream ------------
    x2d = x.reshape(rows, L)
    scale_col = scale.reshape(rows, 1)

    budget = max(block_bytes // itemsize, sublane * 128)            # elems / block
    rows_p, L_p = rows, L

    if rows * L <= budget:
        # Whole array fits in one block (block dims == full dims: always legal).
        R, T = rows, L
    else:
        # --- lane tile T: prefer a multiple of 128 that divides L (no pad) --
        if L % 128 == 0:
            T = _largest_divisor_tile(L, 128, budget // sublane)
        elif sublane * L <= budget:
            T = L                                  # full lane extent, no pad
        else:
            L_p = _round_up(L, 128)                # rare fallback: pad lanes
            T = _largest_divisor_tile(L_p, 128, budget // sublane)
        # --- row tile R: multiple of `sublane` dividing rows, or full extent -
        max_r = max(budget // T, sublane)
        if rows <= max_r:
            R = rows
        else:
            R = _largest_divisor_tile(rows, sublane, max_r)
            if R is None:                          # rows not a multiple of 8/16
                rows_p = _round_up(rows, sublane)
                R = _largest_divisor_tile(rows_p, sublane, max_r)

    padded = (rows_p, L_p) != (rows, L)
    if padded:
        x2d = jnp.pad(x2d, ((0, rows_p - rows), (0, L_p - L)))
        scale_col = jnp.pad(scale_col, ((0, rows_p - rows), (0, 0)))

    grid = (rows_p // R, L_p // T)

    out2d = pl.pallas_call(
        cca_scale_relu_kernel,
        out_shape=jax.ShapeDtypeStruct((rows_p, L_p), out_dtype),
        grid_spec=pltpu.PrefetchScalarGridSpec(
            num_scalar_prefetch=0,
            grid=grid,
            in_specs=[
                pl.BlockSpec((R, 1), lambda r, s: (r, 0)),    # per-row scale
                pl.BlockSpec((R, T), lambda r, s: (r, s)),    # x tile
            ],
            out_specs=pl.BlockSpec((R, T), lambda r, s: (r, s)),
        ),
        compiler_params=pltpu.CompilerParams(
            dimension_semantics=("parallel", "parallel"),
            vmem_limit_bytes=32 * 1024 * 1024),
        # Alias only when x2d is a freshly materialized (padded) buffer;
        # otherwise XLA would insert a defensive copy of the non-donated view.
        input_output_aliases=({1: 0} if padded else {}),
        cost_estimate=pl.CostEstimate(
            flops=2 * rows_p * L_p,
            transcendentals=0,
            bytes_accessed=2 * rows_p * L_p * itemsize + rows_p * 4),
    )(scale_col, x2d)

    if padded:
        out2d = out2d[:rows, :L]
    return out2d.reshape(B, F_x, H, W)


def cca_reference(g, x, wx, bx, wg, bg):
    """Pure-JAX reference matching the PyTorch forward."""
    avg_x = jnp.mean(x, axis=(2, 3))                  # (B, F_x)
    avg_g = jnp.mean(g, axis=(2, 3))                  # (B, F_g)
    att_x = avg_x @ wx.T + bx                         # (B, F_x)
    att_g = avg_g @ wg.T + bg                         # (B, F_x)
    scale = jax.nn.sigmoid((att_x + att_g) / 2.0)[:, :, None, None]
    return jnp.maximum(x * scale, 0.0)


if __name__ == "__main__":
    key = jax.random.PRNGKey(0)
    k_g, k_x, k_wx, k_bx, k_wg, k_bg = jax.random.split(key, 6)

    # ---- small test (single-block path) ------------------------------------
    B, F_g, F_x = 2, 8, 4
    H = W = 16
    Hg = Wg = 8

    g = jax.random.normal(k_g, (B, F_g, Hg, Wg), dtype=jnp.float32)
    x = jax.random.normal(k_x, (B, F_x, H, W), dtype=jnp.float32)

    # nn.Linear convention: W (out, in), b (out,)
    wx = 0.1 * jax.random.normal(k_wx, (F_x, F_x), dtype=jnp.float32)
    bx = 0.1 * jax.random.normal(k_bx, (F_x,), dtype=jnp.float32)
    wg = 0.1 * jax.random.normal(k_wg, (F_x, F_g), dtype=jnp.float32)
    bg = 0.1 * jax.random.normal(k_bg, (F_x,), dtype=jnp.float32)

    out = cca_forward(g, x, wx, bx, wg, bg)
    jax.block_until_ready(out)
    ref = cca_reference(g, x, wx, bx, wg, bg)
    assert out.shape == x.shape
    assert jnp.allclose(out, ref, atol=1e-5, rtol=1e-5), "small-shape mismatch"

    # ---- medium test (exercises the tiled (R, T) path, awkward F_x) --------
    B2, F_g2, F_x2 = 2, 16, 12
    H2 = W2 = 224
    g2 = jax.random.normal(k_g, (B2, F_g2, H2 // 2, W2 // 2), dtype=jnp.float32)
    x2 = jax.random.normal(k_x, (B2, F_x2, H2, W2), dtype=jnp.float32)
    wx2 = 0.1 * jax.random.normal(k_wx, (F_x2, F_x2), dtype=jnp.float32)
    bx2 = 0.1 * jax.random.normal(k_bx, (F_x2,), dtype=jnp.float32)
    wg2 = 0.1 * jax.random.normal(k_wg, (F_x2, F_g2), dtype=jnp.float32)
    bg2 = 0.1 * jax.random.normal(k_bg, (F_x2,), dtype=jnp.float32)

    out2 = cca_forward(g2, x2, wx2, bx2, wg2, bg2)
    jax.block_until_ready(out2)
    ref2 = cca_reference(g2, x2, wx2, bx2, wg2, bg2)
    assert out2.shape == x2.shape
    assert jnp.allclose(out2, ref2, atol=1e-5, rtol=1e-5), "tiled-path mismatch"

    print("KERNEL_OK")
</pallas_src>

<mosaic_0001>
module attributes {stable_mosaic.version = 11 : i64} {
  func.func @cca_scale_relu_kernel(%arg0: i32, %arg1: i32, %arg2: memref<8x1xf32, #tpu.memory_space<vmem>>, %arg3: memref<8x256xf32, #tpu.memory_space<vmem>>, %arg4: memref<8x256xf32, #tpu.memory_space<vmem>>) attributes {dimension_semantics = [#tpu.dimension_semantics<parallel>, #tpu.dimension_semantics<parallel>], iteration_bounds = array<i64: 1, 1>, scalar_prefetch = 0 : i64, scratch_operands = 0 : i64, tpu.core_type = #tpu.core_type<tc>, window_params = [{transform_indices = @transform_0, window_bounds = array<i64: 8, 1>}, {transform_indices = @transform_1, window_bounds = array<i64: 8, 256>}, {transform_indices = @transform_2, window_bounds = array<i64: 8, 256>}]} {
    %c0 = arith.constant 0 : index
    %c0_0 = arith.constant 0 : index
    %0 = vector.load %arg3[%c0, %c0_0] : memref<8x256xf32, #tpu.memory_space<vmem>>, vector<8x256xf32>
    %c0_1 = arith.constant 0 : index
    %c0_2 = arith.constant 0 : index
    %1 = vector.load %arg2[%c0_1, %c0_2] : memref<8x1xf32, #tpu.memory_space<vmem>>, vector<8x1xf32>
    %2 = vector.broadcast %1 : vector<8x1xf32> to vector<8x256xf32>
    %3 = arith.mulf %0, %2 : vector<8x256xf32>
    %cst = arith.constant 0.000000e+00 : f32
    %4 = vector.broadcast %cst : f32 to vector<8x256xf32>
    %5 = arith.maximumf %3, %4 : vector<8x256xf32>
    %c0_3 = arith.constant 0 : index
    %c0_4 = arith.constant 0 : index
    %6 = vector.load %arg4[%c0_3, %c0_4] : memref<8x256xf32, #tpu.memory_space<vmem>>, vector<8x256xf32>
    tpu.vector_store %arg4[%c0_3, %c0_4], %5 {strides = array<i32>} : memref<8x256xf32, #tpu.memory_space<vmem>>, vector<8x256xf32>,
    return
  }
  func.func @transform_0(%arg0: i32, %arg1: i32) -> (i32, i32) {
    %c0_i32 = arith.constant 0 : i32
    %c0_i32_0 = arith.constant 0 : i32
    return %arg0, %c0_i32 : i32, i32
  }
  func.func @transform_1(%arg0: i32, %arg1: i32) -> (i32, i32) {
    %c0_i32 = arith.constant 0 : i32
    return %arg0, %arg1 : i32, i32
  }
  func.func @transform_2(%arg0: i32, %arg1: i32) -> (i32, i32) {
    %c0_i32 = arith.constant 0 : i32
    return %arg0, %arg1 : i32, i32
  }
}

</mosaic_0001>

<bundles_post_ra>
// kernel: tpu_custom_call.1
= control target key start
LH: loop header
LB: loop body
LE: loop exit
PB: predicated region body
PF: predicated region fallthrough
CT: control target
= control target key end

     0   :  { %7 = vsyncpa [#allocation3], 0  ;;  %s140_s0 = inlined_call_operand.vmem [shape: f32[8,1], index: 0, kind: input, shape index: {}]   ;;  %s141_s1 = inlined_call_operand.hbm [shape: f32[8,256], index: 1, kind: input, shape index: {}]   ;;  %s142_s2 = inlined_call_operand.hbm [shape: f32[8,256], index: 2, kind: output, shape index: {}]  }
   0x1   :  { %8 = vsyncpa [#allocation4], 0  ;;  %s16_s11 = sshll.u32 %s141_s1, 4  ;;  %s113_s12 = smov [#allocation2]   ;;  %s17_s11 = int_to_ptr.hbm [resolvable:$true] %s16_s11 }
   0x2   :  { %s18_s13 = sshll.u32 %s113_s12, 4  ;;  %s19_s13 = int_to_ptr.vmem [resolvable:$true] %s18_s13 }
   0x3   :  { %21 = dma.hbm_to_vmem [thread:$0]  %s17_s11, 256, %s19_s13, [#allocation3]  }
   0x4   :  { %109 = dma.done.wait [#allocation3], 256  }
   0x5   :  { %110 = vsyncadd [#allocation3], 4294967040  ;;  %v114_v0 = vmov 0   ;;  %v28_v1 = vld [vmem:[%s140_s0] sm:$0xff]  ;;  %v27_v3 = vld [vmem:[#allocation2 + $0x8] sm:$0xff]  ;;  %s115_s1 = smov [#allocation5]  }
   0x6   :  { %60 = vset.pattern.permute.xlu0 %v114_v0  ;;  %v26_v2 = vld [vmem:[#allocation2] sm:$0xff]  ;;  %s45_s16 = sshll.u32 %s115_s1, 4  ;;  %s47_s19 = sshll.u32 %s142_s2, 4  ;;  %s46_s16 = int_to_ptr.vmem [resolvable:$true] %s45_s16  ;;  %s48_s19 = int_to_ptr.hbm [resolvable:$true] %s47_s19 }
   0x7   :  { %31 = vperm.xlu0 %60, %v28_v1  }
  0x79   :  { %v32_v4 = vpop.permute.xlu0 %31 }
  0x7a   :  { %v34_v5 = vmul.f32 %v32_v4, %v26_v2  ;;  %v35_v6 = vmul.f32 %v32_v4, %v27_v3 }
  0x7c   :  { %v36_v7 = vmax.f32 %v34_v5, 0.0  ;;  %v37_v8 = vmax.f32 %v35_v6, 0.0 }
  0x7e   :  { %38 = vst [vmem:[#allocation5] sm:$0xff] %v36_v7 }
  0x7f   :  { %39 = vst [vmem:[#allocation5 + $0x8] sm:$0xff] %v37_v8 }
  0x80   :  { %50 = dma.vmem_to_hbm [thread:$0]  %s46_s16, 256, %s48_s19, [#allocation4]  }
  0x81   :  { %111 = dma.done.wait [#allocation4], 256  }
  0x82   :  { %112 = vsyncadd [#allocation4], 4294967040 }
  0x83   :  { %55 = vsyncpa [#allocation3], 1 }
  0x84   :  { %56 = vsyncpa [#allocation4], 1 }

</bundles_post_ra>
